<compile_context>
chip_gen: v7x
topology: tpu7x:2x2x1
jax: 0.10.0
libtpu: 0.0.40
codegen_flags: <defaults>
</compile_context>

<pallas_src>
import math

import jax
import jax.numpy as jnp
from jax.experimental import pallas as pl
from jax.experimental.pallas import tpu as pltpu

LANE = 128  # lane width; all Cout are padded to this for lane-dense stores


def _round_up(a, m):
    return ((a + m - 1) // m) * m


# --------------------------------------------------------------------------
# Pallas kernels
# --------------------------------------------------------------------------
def _conv_bias_relu_kernel(p_ref, w_ref, b_ref, o_ref):
    # p_ref: (tm, K) bf16 im2col patches, w_ref: (K, 128) bf16 BN-folded weight,
    # b_ref: (1, 128) f32 folded bias.  MXU matmul, f32 accumulate, VPU epilogue.
    acc = jnp.dot(p_ref[...], w_ref[...], preferred_element_type=jnp.float32)
    o_ref[...] = jnp.maximum(acc + b_ref[...], 0.0).astype(o_ref.dtype)


def _maxpool_kernel(t_ref, o_ref):
    # t_ref: (T, tr, 128) window taps in a lane-dense layout; reduce over taps.
    o_ref[...] = jnp.max(t_ref[...], axis=0)


# --------------------------------------------------------------------------
# Pallas wrappers
# --------------------------------------------------------------------------
def _pick_tm(M, target=512):
    """Row-tile for the conv matmul: multiple of 16 (bf16 sublanes), at least
    two grid steps when possible (megacore), capped at `target`."""
    if M <= 16:
        return M  # full-dim block (always legal)
    return min(target, _round_up(pl.cdiv(M, 2), 16), _round_up(M, 16))


def conv_bias_relu_matmul(patches, w_padded, bias_padded, cout):
    """patches: (M, K) bf16; w_padded: (K, 128) bf16; bias_padded: (1, 128) f32.

    Returns (M, cout) f32.  Output is computed lane-dense (128 channels) and
    sliced back to the real channel count outside the kernel."""
    M, K = patches.shape
    tm = _pick_tm(M)
    grid = (pl.cdiv(M, tm),)

    # VMEM budget: double-buffered patch tile + output tile + resident weight.
    need = (2 * tm * K * 2) + (2 * tm * LANE * 4) + (K * LANE * 2) + (LANE * 4)
    vmem_limit = int(min(max(4 * need, 4 * 1024 * 1024), 32 * 1024 * 1024))

    out = pl.pallas_call(
        _conv_bias_relu_kernel,
        out_shape=jax.ShapeDtypeStruct((M, LANE), jnp.float32),
        grid=grid,
        in_specs=[
            pl.BlockSpec((tm, K), lambda i: (i, 0)),
            # grid-invariant blocks: fetched once, buffer reused every step
            pl.BlockSpec((K, LANE), lambda i: (0, 0)),
            pl.BlockSpec((1, LANE), lambda i: (0, 0)),
        ],
        out_specs=pl.BlockSpec((tm, LANE), lambda i: (i, 0)),
        compiler_params=pltpu.CompilerParams(
            dimension_semantics=("parallel",),
            vmem_limit_bytes=vmem_limit,
        ),
    )(patches, w_padded, bias_padded)
    return out[:, :cout]


def maxpool_reduce(taps):
    """taps: (T, R, 128) f32 -> (R, 128) elementwise max over the T taps."""
    T, R, _ = taps.shape
    if R <= 16:
        tr = R
    else:
        tr = min(1024, _round_up(pl.cdiv(R, 2), 8))
    return pl.pallas_call(
        _maxpool_kernel,
        out_shape=jax.ShapeDtypeStruct((R, LANE), jnp.float32),
        grid=(pl.cdiv(R, tr),),
        in_specs=[pl.BlockSpec((T, tr, LANE), lambda i: (0, i, 0))],
        out_specs=pl.BlockSpec((tr, LANE), lambda i: (i, 0)),
        compiler_params=pltpu.CompilerParams(dimension_semantics=("parallel",)),
    )(taps)


# --------------------------------------------------------------------------
# Glue: im2col extraction (plain JAX), layer helpers, parameter init/prep
# --------------------------------------------------------------------------
def _out_size(h, k, stride, dilation, pad):
    return (h + 2 * pad - dilation * (k - 1) - 1) // stride + 1


def _im2col_bf16(x_nhwc, kh, kw, stride, dilation, pad):
    """Returns bf16 patch matrix (N*OH*OW, KH*KW*C) and (N, OH, OW)."""
    n, h, w, c = x_nhwc.shape
    oh = _out_size(h, kh, stride, dilation, pad)
    ow = _out_size(w, kw, stride, dilation, pad)
    xp = jnp.pad(
        x_nhwc.astype(jnp.bfloat16),
        ((0, 0), (pad, pad), (pad, pad), (0, 0)),
        constant_values=0.0,
    )
    cols = []
    for i in range(kh):
        for j in range(kw):
            hi = i * dilation
            wj = j * dilation
            sl = xp[
                :,
                hi : hi + stride * (oh - 1) + 1 : stride,
                wj : wj + stride * (ow - 1) + 1 : stride,
                :,
            ]
            cols.append(sl)
    patches = jnp.concatenate(cols, axis=-1)  # (N, OH, OW, KH*KW*C)
    return patches.reshape(n * oh * ow, kh * kw * c), (n, oh, ow)


def conv_bn_relu_layer(x_nhwc, layer_params, k, stride, dilation, pad):
    patches, (n, oh, ow) = _im2col_bf16(x_nhwc, k, k, stride, dilation, pad)
    out = conv_bias_relu_matmul(
        patches, layer_params["w"], layer_params["bias"], layer_params["cout"]
    )
    return out.reshape(n, oh, ow, layer_params["cout"])


def maxpool3x3_s2(x_nhwc):
    n, h, w, c = x_nhwc.shape
    oh = _out_size(h, 3, 2, 1, 1)
    ow = _out_size(w, 3, 2, 1, 1)
    xp = jnp.pad(
        x_nhwc, ((0, 0), (1, 1), (1, 1), (0, 0)), constant_values=-jnp.inf
    )
    taps = []
    for i in range(3):
        for j in range(3):
            sl = xp[:, i : i + 2 * (oh - 1) + 1 : 2, j : j + 2 * (ow - 1) + 1 : 2, :]
            taps.append(sl.reshape(-1))
    taps = jnp.stack(taps, axis=0)  # (9, L) — elementwise max is layout-agnostic
    L = n * oh * ow * c
    Lp = _round_up(L, LANE)
    if Lp != L:
        taps = jnp.pad(taps, ((0, 0), (0, Lp - L)))
    taps = taps.reshape(9, Lp // LANE, LANE)  # lane-dense
    out = maxpool_reduce(taps)  # (Lp//128, 128)
    return out.reshape(-1)[:L].reshape(n, oh, ow, c)


def init_params(key, in_channel):
    # (cin, cout, kernel) per layer — small synthetic widths.
    cfg = {
        "stem": (in_channel, 8, 7),
        "layer1": (8, 8, 3),
        "layer2": (8, 16, 3),
        "layer3": (16, 32, 3),
        "layer4": (32, 32, 3),
    }
    eps = 1e-5
    params = {}
    for idx, (name, (cin, cout, k)) in enumerate(cfg.items()):
        kw_key, kg, kb, km, kv = jax.random.split(jax.random.fold_in(key, idx), 5)
        fan_in = k * k * cin
        # weight stored directly in im2col layout (KH*KW*Cin, Cout)
        w = jax.random.normal(kw_key, (fan_in, cout), jnp.float32) / math.sqrt(fan_in)
        gamma = 1.0 + 0.05 * jax.random.normal(kg, (cout,), jnp.float32)
        beta = 0.05 * jax.random.normal(kb, (cout,), jnp.float32)
        running_mean = 0.05 * jax.random.normal(km, (cout,), jnp.float32)
        running_var = jnp.abs(1.0 + 0.05 * jax.random.normal(kv, (cout,), jnp.float32))
        scale = gamma / jnp.sqrt(running_var + eps)
        bias = beta - running_mean * scale
        params[name] = {
            "w": w,
            "scale": scale.reshape(1, cout),
            "bias": bias.reshape(1, cout),
        }
    return params


def prepare_params(params):
    """Fold BN scale into weights, pad Cout to 128 lanes, cast weights to bf16."""
    prepped = {}
    for name, p in params.items():
        w = p["w"] * p["scale"]  # fold BN scale: (K, Cout)
        cout = w.shape[1]
        w_padded = jnp.pad(w, ((0, 0), (0, LANE - cout))).astype(jnp.bfloat16)
        bias_padded = jnp.pad(p["bias"], ((0, 0), (0, LANE - cout)))  # f32 (1,128)
        prepped[name] = {"w": w_padded, "bias": bias_padded, "cout": cout}
    return prepped


# --------------------------------------------------------------------------
# Forward pass: returns list(self.encoders(x).values()) == [aux, out]
# --------------------------------------------------------------------------
def basic_deeplabv3_encoder_forward(x_nchw, prepped_params, replace_stride_with_dilation):
    assert isinstance(replace_stride_with_dilation, (tuple, list))
    assert len(replace_stride_with_dilation) == 3

    x = jnp.transpose(x_nchw, (0, 2, 3, 1))  # NCHW -> NHWC

    # stem
    x = conv_bn_relu_layer(x, prepped_params["stem"], k=7, stride=2, dilation=1, pad=3)
    x = maxpool3x3_s2(x)
    # layer1 (always stride 1)
    x = conv_bn_relu_layer(x, prepped_params["layer1"], k=3, stride=1, dilation=1, pad=1)

    feats = {}
    dilation = 1
    for name, replace in zip(
        ("layer2", "layer3", "layer4"), replace_stride_with_dilation
    ):
        if replace:
            dilation *= 2
            stride, pad = 1, dilation
        else:
            stride, pad = 2, 1
        x = conv_bn_relu_layer(
            x, prepped_params[name], k=3, stride=stride, dilation=dilation, pad=pad
        )
        if name == "layer3":
            feats["aux"] = x
        elif name == "layer4":
            feats["out"] = x

    # IntermediateLayerGetter registration order: layer3 ("aux") then layer4 ("out").
    outs_nhwc = [feats["aux"], feats["out"]]
    # convert back to PyTorch NCHW convention
    return [jnp.transpose(o, (0, 3, 1, 2)) for o in outs_nhwc]


# TODO(synk): torchvision "pretrained=True" checkpoint loading has no Pallas
# equivalent; parameters are synthesized deterministically above instead.

if __name__ == "__main__":
    key = jax.random.PRNGKey(0)
    x = jax.random.normal(jax.random.fold_in(key, 100), (2, 4, 16, 16), jnp.float32)
    params = init_params(jax.random.fold_in(key, 1), in_channel=4)
    prepped = prepare_params(params)

    outs = basic_deeplabv3_encoder_forward(
        x, prepped, replace_stride_with_dilation=(False, True, True)
    )
    outs = jax.block_until_ready(outs)
    assert outs[0].shape == (2, 32, 2, 2)   # aux (layer3)
    assert outs[1].shape == (2, 32, 2, 2)   # out (layer4)
    assert all(bool(jnp.all(jnp.isfinite(o))) for o in outs)
    print("KERNEL_OK")
</pallas_src>

<mosaic_0001>
module attributes {stable_mosaic.version = 11 : i64} {
  func.func @_conv_bias_relu_kernel(%arg0: i32, %arg1: memref<64x196xbf16, #tpu.memory_space<vmem>>, %arg2: memref<196x128xbf16, #tpu.memory_space<vmem>>, %arg3: memref<1x128xf32, #tpu.memory_space<vmem>>, %arg4: memref<64x128xf32, #tpu.memory_space<vmem>>) attributes {dimension_semantics = [#tpu.dimension_semantics<parallel>], iteration_bounds = array<i64: 2>, scalar_prefetch = 0 : i64, scratch_operands = 0 : i64, tpu.core_type = #tpu.core_type<tc>, window_params = [{transform_indices = @transform_0, window_bounds = array<i64: 64, 196>}, {pipeline_mode = #tpu.pipeline_mode<synchronous>, transform_indices = @transform_1, window_bounds = array<i64: 196, 128>}, {pipeline_mode = #tpu.pipeline_mode<synchronous>, transform_indices = @transform_2, window_bounds = array<i64: 1, 128>}, {transform_indices = @transform_3, window_bounds = array<i64: 64, 128>}]} {
    %c0 = arith.constant 0 : index
    %c0_0 = arith.constant 0 : index
    %0 = vector.load %arg1[%c0, %c0_0] : memref<64x196xbf16, #tpu.memory_space<vmem>>, vector<64x196xbf16>
    %c0_1 = arith.constant 0 : index
    %c0_2 = arith.constant 0 : index
    %1 = vector.load %arg2[%c0_1, %c0_2] : memref<196x128xbf16, #tpu.memory_space<vmem>>, vector<196x128xbf16>
    %cst = arith.constant dense<0.000000e+00> : vector<64x128xf32>
    %2 = tpu.matmul %0, %1, %cst {dimension_numbers = #tpu.dot_dimension_numbers<[1], [0], [0], [1], [0, 0, 1, 1], [], []>} : vector<64x196xbf16>, vector<196x128xbf16>, vector<64x128xf32> -> vector<64x128xf32>
    %c0_3 = arith.constant 0 : index
    %c0_4 = arith.constant 0 : index
    %3 = vector.load %arg3[%c0_3, %c0_4] : memref<1x128xf32, #tpu.memory_space<vmem>>, vector<1x128xf32>
    %4 = vector.broadcast %3 : vector<1x128xf32> to vector<64x128xf32>
    %5 = arith.addf %2, %4 : vector<64x128xf32>
    %cst_5 = arith.constant 0.000000e+00 : f32
    %6 = vector.broadcast %cst_5 : f32 to vector<64x128xf32>
    %7 = arith.maximumf %5, %6 : vector<64x128xf32>
    %c0_6 = arith.constant 0 : index
    %c0_7 = arith.constant 0 : index
    %8 = vector.load %arg4[%c0_6, %c0_7] : memref<64x128xf32, #tpu.memory_space<vmem>>, vector<64x128xf32>
    tpu.vector_store %arg4[%c0_6, %c0_7], %7 {strides = array<i32>} : memref<64x128xf32, #tpu.memory_space<vmem>>, vector<64x128xf32>,
    return
  }
  func.func @transform_0(%arg0: i32) -> (i32, i32) {
    %c0_i32 = arith.constant 0 : i32
    %c0_i32_0 = arith.constant 0 : i32
    return %arg0, %c0_i32 : i32, i32
  }
  func.func @transform_1(%arg0: i32) -> (i32, i32) {
    %c0_i32 = arith.constant 0 : i32
    %c0_i32_0 = arith.constant 0 : i32
    %c0_i32_1 = arith.constant 0 : i32
    return %c0_i32, %c0_i32_0 : i32, i32
  }
  func.func @transform_2(%arg0: i32) -> (i32, i32) {
    %c0_i32 = arith.constant 0 : i32
    %c0_i32_0 = arith.constant 0 : i32
    %c0_i32_1 = arith.constant 0 : i32
    return %c0_i32, %c0_i32_0 : i32, i32
  }
  func.func @transform_3(%arg0: i32) -> (i32, i32) {
    %c0_i32 = arith.constant 0 : i32
    %c0_i32_0 = arith.constant 0 : i32
    return %arg0, %c0_i32 : i32, i32
  }
}

</mosaic_0001>

<bundles_post_ra>
// kernel: tpu_custom_call.1
= control target key start
LH: loop header
LB: loop body
LE: loop exit
PB: predicated region body
PF: predicated region fallthrough
CT: control target
= control target key end

     0   :  { %8 = vsyncpa [#allocation3], 0  ;;  %s911_s0 = inlined_call_operand.vmem [shape: bf16[128,196], index: 0, kind: input, shape index: {}]   ;;  %s912_s1 = inlined_call_operand.vmem [shape: bf16[196,128], index: 1, kind: input, shape index: {}]   ;;  %s913_s2 = inlined_call_operand.vmem [shape: f32[1,128], index: 2, kind: input, shape index: {}]   ;;  %s914_s3 = inlined_call_operand.hbm [shape: f32[128,128], index: 3, kind: output, shape index: {}]  }
   0x1   :  { %10 = vsyncpa [#allocation3 + $0x1], 0  ;;  %s723_s12 = smov 0   ;;  %s725_s13 = smov 0  }
   0x2   :  { %s727_s14 = smov 0   ;;  %s729_s15 = smov 0  }
   0x3 LB: > { %s744_s16 = sadd.s32 4294967295, %s697_s15   ;;  %s501_s17 = sadd.s32 4294967294, %s697_s15   ;;  %s697_s15 = sphi %s729_s15, %s920_s15   ;;  %s693_s14 = sphi %s727_s14, %s919_s14   ;;  %s689_s13 = sphi %s725_s13, %s918_s13   ;;  %s685_s12 = sphi %s723_s12, %s917_s12  }
   0x4   : > { %s748_s18 = sadd.s32 1, %s697_s15   ;;  %s91_s19 = sadd.s32 1, %s693_s14 }
   0x5   : > { %s88_s20 = ssub.s32 %s697_s15, %s748_s18  ;;  %p101_p0 = scmp.ne.s32.totalorder %s693_s14, %s689_s13 }
   0x6   : > { %p89_p1 = scmp.eq.s32.totalorder %s88_s20, 0  ;;  %p102_p2 = scmp.eq.s32.totalorder %s744_s16, 1 }
   0x7   : > { %p107_p3 = scmp.ne.s32.totalorder %s689_s13, %s685_s12  ;;  %p108_p4 = scmp.eq.s32.totalorder %s501_s17, 1 }
   0x8   : > { %s759_s21 = scalar_select %p89_p1, %s693_s14, %s91_s19  }
   0x9   : > { %p761_p5 = por %p102_p2, %p101_p0  ;;  %p765_p6 = por %p108_p4, %p107_p3 }
   0xa   : > { %p504_p7 = scmp.ge.s32.totalorder %s697_s15, 1  ;;  %p142_p8 = scmp.lt.s32.totalorder %s697_s15, 3 }
   0xc   : > { %p143_p9 = pnand %p504_p7, %p142_p8 }
   0xd   : > { %v610_v0 = vld [vmem:[%s912_s1] sm:$0xff] (!%p143_p9)   ;;  %v699_v1 = vmov (!%p143_p9), 0   ;;  %v611_v2 = vld [vmem:[%s912_s1 + $0x8] sm:$0xff] (!%p143_p9)   ;;  %s506_s28 = sshll.u32 (!%p143_p9), %s744_s16, 3  ;;  %v612_v3 = vld [vmem:[%s912_s1 + $0x10] sm:$0xff] (!%p143_p9)   ;;  %vm327_vm0 = vcmask (!%p143_p9), 556032  }
   0xe   : > { %146 = sbr.rel (%p143_p9) target bundleno = 307 (0x133), region = 32  ;;  %344 = vmatprep.subr.bf16.mxu0 (!%p143_p9), %v699_v1  ;;  %542 = vmatprep.subr.bf16.mxu1 (!%p143_p9), %v699_v1  ;;  %p168_p10 = scmp.lt.s32.totalorder (!%p143_p9), %s506_s28, 15  ;;  %v613_v4 = vld [vmem:[%s912_s1 + $0x18] sm:$0xff] (!%p143_p9)   ;;  %v614_v6 = vld [vmem:[%s912_s1 + $0x20] sm:$0xff] (!%p143_p9)   ;;  %v615_v8 = vld [vmem:[%s912_s1 + $0x28] sm:$0xff] (!%p143_p9)   ;;  %vm340_vm1 = vcmask (!%p143_p9), 1041408  }
   0xf   : > { %345 = vmatpush1.bf16.msra.mxu0 (!%p143_p9), %v610_v0  ;;  %555 = vmatpush1.bf16.msra.mxu1 (!%p143_p9), %v610_v0  ;;  %v616_v9 = vld [vmem:[%s912_s1 + $0x30] sm:$0xff] (!%p143_p9)   ;;  %v617_v10 = vld [vmem:[%s912_s1 + $0x38] sm:$0xff] (!%p143_p9)   ;;  %v618_v11 = vld [vmem:[%s912_s1 + $0x40] sm:$0xff] (!%p143_p9)   ;;  %s164_s11 = sand.u32 (!%p143_p9), 1, %s689_s13   ;;  %s541_s24 = sshll.u32 (!%p143_p9), %s744_s16, 10 }
  0x10   : > { %346 = vmatprep.subr.bf16.mxu0 (!%p143_p9), %v699_v1  ;;  %543 = vmatprep.subr.bf16.mxu1 (!%p143_p9), %v699_v1  ;;  %v619_v12 = vld [vmem:[%s912_s1 + $0x48] sm:$0xff] (!%p143_p9)   ;;  %v620_v13 = vld [vmem:[%s912_s1 + $0x50] sm:$0xff] (!%p143_p9)   ;;  %v621_v14 = vld [vmem:[%s912_s1 + $0x58] sm:$0xff] (!%p143_p9)   ;;  %s505_s20 = sshll.u32 (!%p143_p9), %s164_s11, 6  ;;  %s870_s16 = scalar_lea.sflag (!%p143_p9), [#allocation3], %s164_s11 }
  0x11   : > { %v622_v15 = vld [vmem:[%s912_s1 + $0x60] ss:$0 sps:$4 sm:$0x33] (!%p143_p9)   ;;  %s700_s30 = smov (!%p143_p9), [#allocation2]  }
  0x12   : > { %v342_v16 = vsel (!%p143_p9), %vm340_vm1, %v622_v15, 0  ;;  %v509_v23 = vld [vmem:[%s913_s2] ss:$0 sm:$0xff] (!%p143_p9) }
  0x13   : > { %347 = vmatpush1.bf16.msra.mxu0 (!%p143_p9), %v611_v2  ;;  %556 = vmatpush1.bf16.msra.mxu1 (!%p143_p9), %v611_v2 }
  0x14   : > { %348 = vmatprep.subr.bf16.mxu0 (!%p143_p9), %v699_v1  ;;  %544 = vmatprep.subr.bf16.mxu1 (!%p143_p9), %v699_v1 }
  0x15   : > { %s922_s28 = smov (!%p168_p10, %s506_s28), 15 }
  0x16   : > { %s540_s4 = sshll.u32 %s922_s28, 3  ;;  %s864_s28 = scalar_lea.hbm %s914_s3, %s541_s24 }
  0x17   : > { %349 = vmatpush1.bf16.msra.mxu0 %v612_v3  ;;  %557 = vmatpush1.bf16.msra.mxu1 %v612_v3  ;;  %s793_s9 = scalar_lea.vmem %s911_s0, %s540_s4  ;;  %s639_s4 = sshll.u32 %s700_s30, 4  ;;  %s640_s4 = int_to_ptr.vmem [resolvable:$false] %s639_s4 }
  0x18   : > { %350 = vmatprep.subr.bf16.mxu0 %v699_v1  ;;  %545 = vmatprep.subr.bf16.mxu1 %v699_v1  ;;  %v625_v5 = vld [vmem:[%s793_s9 + $0x4] ss:$8 sps:$4 sm:$0xff]   ;;  %v623_v17 = vld [vmem:[%s793_s9] ss:$8 sps:$4 sm:$0xff]   ;;  %v629_v19 = vld [vmem:[%s793_s9 + $0x14] ss:$8 sps:$4 sm:$0xff]  }
  0x19   : > { %v628_v7 = vld [vmem:[%s793_s9 + $0x24] ss:$8 sps:$4 sm:$0xff]   ;;  %531 = vmatprep.mubr.msk.bf16.mxu0 %vm327_vm0, %v625_v5  ;;  %v626_v18 = vld [vmem:[%s793_s9 + $0x20] ss:$8 sps:$4 sm:$0xff]   ;;  %v631_v20 = vld [vmem:[%s793_s9 + $0x34] ss:$8 sps:$4 sm:$0xff]  }
  0x1a   : > { %533 = vmatprep.mubr.msk.bf16.mxu1 %vm327_vm0, %v628_v7  ;;  %v633_v21 = vld [vmem:[%s793_s9 + $0x10] ss:$8 sps:$4 sm:$0xff]   ;;  %s641_s5 = scalar_lea.vmem %s640_s4, 2048 }
  0x1b   : > { %351 = vmatpush1.bf16.msra.mxu0 %v613_v4  ;;  %558 = vmatpush1.bf16.msra.mxu1 %v613_v4  ;;  %v634_v22 = vld [vmem:[%s793_s9 + $0x30] ss:$8 sps:$4 sm:$0xff]   ;;  %s166_s9 = scalar_lea.vmem [#allocation2], %s505_s20 }
  0x1c   : > { %352 = vmatprep.subr.bf16.mxu0 %v699_v1  ;;  %546 = vmatprep.subr.bf16.mxu1 %v699_v1  ;;  %s439_s25 = sshll.u32 %s166_s9, 4  ;;  %s866_s25 = int_to_ptr.vmem [resolvable:$true] %s439_s25 }
  0x1d   : > { %s635_s29 = scalar_lea.vmem %s866_s25, 1024  ;;  %p642_p0 = scmp.lt.s32.totalorder %s866_s25, %s640_s4 }
  0x1e   : > { %p636_p11 = scmp.ne.s32.totalorder %s866_s25, %s635_s29  ;;  %p643_p1 = scmp.lt.s32.totalorder %s641_s5, %s635_s29 }
  0x1f   : > { %353 = vmatpush1.bf16.msra.mxu0 %v614_v6  ;;  %559 = vmatpush1.bf16.msra.mxu1 %v614_v6 }
  0x20   : > { %354 = vmatprep.subr.bf16.mxu0 %v699_v1  ;;  %547 = vmatprep.subr.bf16.mxu1 %v699_v1  ;;  %p637_p12 = pnand %p636_p11, %p761_p5  ;;  %p644_p2 = por %p643_p1, %p642_p0 }
  0x22   : > { %p638_p13 = pneg %p637_p12 }
  0x23   : > { %355 = vmatpush1.bf16.msra.mxu0 %v615_v8  ;;  %560 = vmatpush1.bf16.msra.mxu1 %v615_v8 }
  0x24   : > { %356 = vmatprep.subr.bf16.mxu0 %v699_v1  ;;  %548 = vmatprep.subr.bf16.mxu1 %v699_v1  ;;  %p645_p3 = pnand %p644_p2, %p638_p13 }
  0x27   : > { %357 = vmatpush1.bf16.msra.mxu0 %v616_v9  ;;  %561 = vmatpush1.bf16.msra.mxu1 %v616_v9 }
  0x28   : > { %358 = vmatprep.subr.bf16.mxu0 %v699_v1  ;;  %549 = vmatprep.subr.bf16.mxu1 %v699_v1 }
  0x2b   : > { %359 = vmatpush1.bf16.msra.mxu0 %v617_v10  ;;  %562 = vmatpush1.bf16.msra.mxu1 %v617_v10 }
  0x2c   : > { %360 = vmatprep.subr.bf16.mxu0 %v699_v1  ;;  %550 = vmatprep.subr.bf16.mxu1 %v699_v1 }
  0x2f   : > { %361 = vmatpush1.bf16.msra.mxu0 %v618_v11  ;;  %563 = vmatpush1.bf16.msra.mxu1 %v618_v11 }
  0x30   : > { %362 = vmatprep.subr.bf16.mxu0 %v699_v1  ;;  %551 = vmatprep.subr.bf16.mxu1 %v699_v1 }
  0x33   : > { %363 = vmatpush1.bf16.msra.mxu0 %v619_v12  ;;  %564 = vmatpush1.bf16.msra.mxu1 %v619_v12 }
  0x34   : > { %364 = vmatprep.subr.bf16.mxu0 %v699_v1  ;;  %552 = vmatprep.subr.bf16.mxu1 %v699_v1 }
  0x37   : > { %365 = vmatpush1.bf16.msra.mxu0 %v620_v13  ;;  %565 = vmatpush1.bf16.msra.mxu1 %v620_v13 }
  0x38   : > { %366 = vmatprep.subr.bf16.mxu0 %v699_v1  ;;  %553 = vmatprep.subr.bf16.mxu1 %v699_v1 }
  0x3b   : > { %367 = vmatpush1.bf16.msra.mxu0 %v621_v14  ;;  %566 = vmatpush1.bf16.msra.mxu1 %v621_v14 }
  0x3c   : > { %368 = vmatprep.subr.bf16.mxu0 %v699_v1  ;;  %554 = vmatprep.subr.bf16.mxu1 %v699_v1 }
  0x3f   : > { %369 = vmatpush1.bf16.msra.mxu0 %v342_v16  ;;  %567 = vmatpush1.bf16.msra.mxu1 %v342_v16 }
  0x42   : > { %377 = vmatmul.mubr.bf16.vlgmr.msra.gmra.mrb[0].mxu0 %v623_v17  ;;  %393 = vmatmul.mubr.bf16.vlgmr.msra.gmra.mrb[0].mxu1 %v626_v18 }
  0x43   : > { %532 = vmatprep.mubr.msk.bf16.mxu0 %vm327_vm0, %v629_v19  ;;  %534 = vmatprep.mubr.msk.bf16.mxu1 %vm327_vm0, %v631_v20 }
  0x4a   : > { %385 = vmatmul.mubr.bf16.gmra.mrb[4].mxu0 %v633_v21  ;;  %401 = vmatmul.mubr.bf16.gmra.mrb[4].mxu1 %v634_v22 }
 0x115   : > { %v378_v24 = vpop.f32.mrb[0].mxu0  ;;  %v394_v25 = vpop.f32.mrb[0].mxu1 }
 0x116   : > { %v379_v26 = vadd.f32 %v509_v23, %v378_v24  ;;  %v395_v27 = vadd.f32 %v509_v23, %v394_v25  ;;  %v380_v28 = vpop.f32.mrb[1].mxu0  ;;  %v396_v29 = vpop.f32.mrb[1].mxu1 }
 0x117   : > { %v381_v30 = vpop.f32.mrb[2].mxu0  ;;  %v397_v31 = vpop.f32.mrb[2].mxu1 }
 0x118   : > { %v409_v32 = vmax.f32 %v379_v26, 0.0  ;;  %v413_v33 = vmax.f32 %v395_v27, 0.0  ;;  %v382_v34 = vadd.f32 %v509_v23, %v381_v30  ;;  %v398_v35 = vadd.f32 %v509_v23, %v397_v31  ;;  %v383_v36 = vpop.f32.mrb[3].mxu0  ;;  %v399_v37 = vpop.f32.mrb[3].mxu1 }
 0x11a   : > { %417 = vst [vmem:[%s166_s9] sm:$0xff] %v409_v32  ;;  %421 = vst [vmem:[%s166_s9 + $0x20] sm:$0xff] %v413_v33  ;;  %v410_v38 = vmax.f32 %v382_v34, 0.0  ;;  %v414_v39 = vmax.f32 %v398_v35, 0.0 }
 0x11c   : > { %418 = vst [vmem:[%s166_s9 + $0x8] sm:$0xff] %v410_v38  ;;  %422 = vst [vmem:[%s166_s9 + $0x28] sm:$0xff] %v414_v39 }
 0x11d   : > { %v386_v40 = vpop.f32.mrb[4].mxu0  ;;  %v402_v41 = vpop.f32.mrb[4].mxu1 }
 0x11e   : > { %v387_v42 = vadd.f32 %v509_v23, %v386_v40  ;;  %v403_v43 = vadd.f32 %v509_v23, %v402_v41  ;;  %v388_v44 = vpop.f32.mrb[5].mxu0  ;;  %v404_v45 = vpop.f32.mrb[5].mxu1 }
 0x11f   : > { %v389_v46 = vpop.f32.mrb[6].mxu0  ;;  %v405_v47 = vpop.f32.mrb[6].mxu1 }
 0x120   : > { %v411_v48 = vmax.f32 %v387_v42, 0.0  ;;  %v415_v49 = vmax.f32 %v403_v43, 0.0  ;;  %v390_v50 = vadd.f32 %v509_v23, %v389_v46  ;;  %v406_v51 = vadd.f32 %v509_v23, %v405_v47  ;;  %v391_v52 = vpop.f32.mrb[7].mxu0  ;;  %v407_v53 = vpop.f32.mrb[7].mxu1 }
 0x122   : > { %419 = vst [vmem:[%s166_s9 + $0x10] sm:$0xff] %v411_v48  ;;  %423 = vst [vmem:[%s166_s9 + $0x30] sm:$0xff] %v415_v49  ;;  %v412_v54 = vmax.f32 %v390_v50, 0.0  ;;  %v416_v55 = vmax.f32 %v406_v51, 0.0 }
 0x124   : > { %420 = vst [vmem:[%s166_s9 + $0x18] sm:$0xff] %v412_v54  ;;  %424 = vst [vmem:[%s166_s9 + $0x38] sm:$0xff] %v416_v55 }
 0x125   : > { %648 = shalt.err (!%p645_p3)
}
 0x126   : > { %s649_s6 = scalar_lea.hbm %s864_s28, 1024  ;;  %s653_s10 = scalar_lea.hbm %s914_s3, 2048 }
 0x127   : > { %p650_p4 = scmp.ne.s32.totalorder %s864_s28, %s649_s6  ;;  %p654_p9 = scmp.lt.u32.totalorder %s864_s28, %s914_s3 }
 0x128   : > { %p655_p10 = scmp.lt.u32.totalorder %s653_s10, %s649_s6  ;;  %p657_p12 = scmp.lt.u32.totalorder %s649_s6, %s864_s28 }
 0x129   : > { %p651_p7 = pnand %p650_p4, %p761_p5 }
 0x12a   : > { %p656_p11 = por %p655_p10, %p654_p9 }
 0x12b   : > { %p652_p8 = pneg %p651_p7 }
 0x12c   : > { %p658_p13 = por %p657_p12, %p656_p11 }
 0x12e   : > { %p659_p0 = pnand %p658_p13, %p652_p8 }
 0x130   : > { %662 = shalt.err (!%p659_p0)
}
 0x131   : > { %s701_s19 = smov 128   ;;  %s702_s20 = smov 8  }
 0x132   : > { %568 = dma.vmem_to_hbm [thread:$0]  (%p761_p5), %s866_s25, 1024, %s864_s28, %s870_s16, %s701_s19, %s701_s19, %s702_s20  }
 0x133 PF: > { %p574_p1 = scmp.ge.s32.totalorder %s697_s15, 2  ;;  %s454_s9 = sand.u32 1, %s685_s12  }
 0x134   : > { %s455_s24 = scalar_lea.sflag [#allocation3], %s454_s9 }
 0x135   : > { %p571_p2 = pnand %p574_p1, %p765_p6 }
 0x137   : > { %680 = dma.done.wait (!%p571_p2), %s455_s24, 1024  }
 0x138   : > { %682 = vsyncadd (!%p571_p2), %s455_s24, 4294966272  ;;  %p13_p3 = scmp.ge.s32.totalorder %s748_s18, 4   ;;  %s917_s12 = smov %s689_s13 }
 0x139   : > { %s918_s13 = smov %s693_s14  ;;  %s919_s14 = smov %s759_s21 }
 0x13a   : > { %s920_s15 = smov %s748_s18  ;;  %15 = sbr.rel (!%p13_p3) target bundleno = 3 (0x3), region = 67 }
 0x141   :  { %460 = vsyncpa [#allocation3], 1 }
 0x142   :  { %462 = vsyncpa [#allocation3 + $0x1], 1 }

</bundles_post_ra>
